<compile_context>
chip_gen: v7x
topology: tpu7x:2x2x1
jax: 0.10.0
libtpu: 0.0.40
codegen_flags: <defaults>
</compile_context>

<pallas_src>
import functools
import math

import jax
import jax.numpy as jnp
from jax import lax
from jax.experimental import pallas as pl
from jax.experimental.pallas import tpu as pltpu


def _round_up(n, m):
    return ((n + m - 1) // m) * m


def _vmem_budget_bytes():
    """~0.85x of physical per-core VMEM; conservative 64 MiB fallback (v7x)."""
    try:
        cap = int(pltpu.get_tpu_info().vmem_capacity_bytes)
        if cap <= 0:
            raise ValueError
    except Exception:
        cap = 64 * 1024 * 1024
    return int(cap * 0.85)


def _projection_kernel(x_ref, w_ref, b_ref, o_ref, m_ref, l_ref, *, n_vt, tv):
    """One (batch-tile, vocab-tile) step of fused projection + log-softmax.

    x_ref: (tb, K)       activation tile (compute dtype)
    w_ref: (K, tv)       weight tile, already transposed in the wrapper
    b_ref: (1, tv) f32   bias tile (-1e30 in padded columns)
    o_ref: (tb, V_pad)   full-vocab output row-block, resident across vocab axis
    m_ref: (tb, 1) f32   running max
    l_ref: (tb, 1) f32   running sum(exp(logit - m))
    """
    j = pl.program_id(1)

    @pl.when(j == 0)
    def _():
        m_ref[...] = jnp.full_like(m_ref, -jnp.inf)
        l_ref[...] = jnp.zeros_like(l_ref)

    # (tb, K) x (K, tv) on the MXU with f32 accumulation (natural layout, no
    # per-step transpose).
    logits = jnp.dot(x_ref[...], w_ref[...], preferred_element_type=jnp.float32)
    logits = logits + b_ref[...]

    # Stage raw logits into the resident output block; normalized at the end.
    start = pl.multiple_of(j * tv, 128)
    o_ref[:, pl.ds(start, tv)] = logits.astype(o_ref.dtype)

    # Online log-sum-exp update (all f32).
    m_old = m_ref[...]
    m_new = jnp.maximum(m_old, jnp.max(logits, axis=-1, keepdims=True))
    l_ref[...] = l_ref[...] * jnp.exp(m_old - m_new) + jnp.sum(
        jnp.exp(logits - m_new), axis=-1, keepdims=True
    )
    m_ref[...] = m_new

    @pl.when(j == n_vt - 1)
    def _():
        lse = m_ref[...] + jnp.log(l_ref[...])  # (tb, 1) f32

        def body(c, carry):
            s = pl.multiple_of(c * tv, 128)
            chunk = o_ref[:, pl.ds(s, tv)].astype(jnp.float32) - lse
            o_ref[:, pl.ds(s, tv)] = chunk.astype(o_ref.dtype)
            return carry

        lax.fori_loop(0, n_vt, body, 0, unroll=(n_vt <= 8))


def projection_layer(x, weight, bias, *, tb_max=256, tv_max=4096,
                     compute_dtype=None, out_dtype=jnp.float32):
    """x: (B, d_model); weight: (vocab, d_model) [PyTorch layout]; bias: (vocab,).

    Returns log_softmax(x @ weight.T + bias, axis=1) as `out_dtype`.
    """
    B, K = x.shape
    V, Kw = weight.shape
    assert Kw == K and bias.shape == (V,)

    # Single compute dtype for both matmul operands (f32 accumulation inside).
    if compute_dtype is None:
        compute_dtype = jnp.promote_types(x.dtype, weight.dtype)
    compute_dtype = jnp.dtype(compute_dtype)
    x_c = x.astype(compute_dtype)
    w_t = weight.T.astype(compute_dtype)            # (K, V): one transpose/call
    bias_f32 = bias.astype(jnp.float32)

    cbytes = compute_dtype.itemsize
    obytes = jnp.dtype(out_dtype).itemsize
    budget = _vmem_budget_bytes()
    lane = 128

    tb_max = max(8, (int(tb_max) // 8) * 8)
    tv_max = max(lane, (int(tv_max) // lane) * lane)

    # ---- vocab tile: bounded by 1/3 of the budget for the double-buffered
    # (K, tv) weight tile, by tv_max, and by the (lane-padded) vocab itself.
    tv_cap_budget = max(lane, ((budget // 3) // max(1, 2 * K * cbytes)) // lane * lane)
    tv_cap_vocab = _round_up(V, lane)
    tv = max(lane, min(tv_max, tv_cap_budget, tv_cap_vocab))
    V_pad = _round_up(V, tv)                        # pad UP, no divisor search

    # ---- batch tile from the remaining budget (honest footprint):
    #   fixed : double-buffered weight + bias tiles
    #   per-tb: double-buffered x tile, double-buffered resident output block,
    #           (tb, tv) f32 logits + exp temporaries, scratch.
    fixed = 2 * tv * K * cbytes + 2 * tv * 4
    per_tb = 2 * K * cbytes + 2 * V_pad * obytes + 2 * tv * 4 + 8
    tb_fit = max(8, (max(0, budget - fixed) // per_tb))
    tb = max(8, min(tb_max, (tb_fit // 8) * 8))

    # Guarantee >=2 batch tiles when possible so the "parallel" batch axis can
    # shard across v7x's two TensorCores.
    B8 = _round_up(B, 8)
    if B8 > 8 and B8 <= 2 * tb:
        tb = _round_up((B8 + 1) // 2, 8)
    B_pad = _round_up(B, tb)

    # ---- padding.  Zero rows are harmless (row-wise softmax); -1e30 bias in
    # padded columns makes them contribute exp(-huge) == 0 to the LSE.
    if B_pad != B:
        x_c = jnp.pad(x_c, ((0, B_pad - B), (0, 0)))
    if V_pad != V:
        w_t = jnp.pad(w_t, ((0, 0), (0, V_pad - V)))
        bias_f32 = jnp.pad(bias_f32, (0, V_pad - V), constant_values=-1e30)
    bias2d = bias_f32.reshape(1, V_pad)

    n_bt = B_pad // tb
    n_vt = V_pad // tv

    footprint = fixed + tb * per_tb
    vmem_limit = int(min(budget, max(32 * 1024 * 1024, footprint + footprint // 4)))
    vmem_limit = int(max(vmem_limit, min(budget, footprint)))

    kernel = functools.partial(_projection_kernel, n_vt=n_vt, tv=tv)

    out = pl.pallas_call(
        kernel,
        out_shape=jax.ShapeDtypeStruct((B_pad, V_pad), out_dtype),
        grid_spec=pltpu.PrefetchScalarGridSpec(
            num_scalar_prefetch=0,
            grid=(n_bt, n_vt),
            in_specs=[
                pl.BlockSpec((tb, K), lambda i, j: (i, 0)),   # activations
                pl.BlockSpec((K, tv), lambda i, j: (0, j)),   # weight (K, tv)
                pl.BlockSpec((1, tv), lambda i, j: (0, j)),   # bias
            ],
            out_specs=pl.BlockSpec((tb, V_pad), lambda i, j: (i, 0)),
            scratch_shapes=[
                pltpu.VMEM((tb, 1), jnp.float32),   # running max
                pltpu.VMEM((tb, 1), jnp.float32),   # running sum-exp
            ],
        ),
        compiler_params=pltpu.CompilerParams(
            dimension_semantics=("parallel", "arbitrary"),
            vmem_limit_bytes=vmem_limit,
        ),
    )(x_c, w_t, bias2d)

    return out[:B, :V]


if __name__ == "__main__":
    def _reference(x, weight, bias):
        return jax.nn.log_softmax(x @ weight.T + bias, axis=1)

    keys = jax.random.split(jax.random.PRNGKey(0), 6)

    # Case 1: aligned small shapes (batch=16, d_model=32, vocab=256).
    d_model, vocab_size, batch = 32, 256, 16
    bound = 1.0 / math.sqrt(d_model)
    weight = jax.random.uniform(keys[0], (vocab_size, d_model), jnp.float32,
                                minval=-bound, maxval=bound)
    bias = jax.random.uniform(keys[1], (vocab_size,), jnp.float32,
                              minval=-bound, maxval=bound)
    x = jax.random.normal(keys[2], (batch, d_model), jnp.float32)

    ref = _reference(x, weight, bias)

    out = jax.block_until_ready(projection_layer(x, weight, bias))
    assert out.shape == (batch, vocab_size)
    assert jnp.allclose(out, ref, atol=1e-5, rtol=1e-5), "mismatch (aligned)"

    # Same tensors, force multiple batch/vocab tiles (online LSE path).
    out_tiled = jax.block_until_ready(
        projection_layer(x, weight, bias, tb_max=8, tv_max=128))
    assert jnp.allclose(out_tiled, ref, atol=1e-5, rtol=1e-5), "mismatch (tiled)"

    # bf16 operands + bf16 output staging (bandwidth / VMEM option).
    out_bf16 = jax.block_until_ready(
        projection_layer(x, weight, bias, compute_dtype=jnp.bfloat16,
                         out_dtype=jnp.bfloat16))
    assert out_bf16.shape == (batch, vocab_size)
    assert bool(jnp.all(jnp.isfinite(out_bf16.astype(jnp.float32))))
    assert jnp.allclose(out_bf16.astype(jnp.float32), ref, atol=1.5e-1), \
        "mismatch (bf16)"

    # Case 2: ragged shapes (batch=10, d_model=48, vocab=200) -> padding paths.
    d_model, vocab_size, batch = 48, 200, 10
    bound = 1.0 / math.sqrt(d_model)
    weight = jax.random.uniform(keys[3], (vocab_size, d_model), jnp.float32,
                                minval=-bound, maxval=bound)
    bias = jax.random.uniform(keys[4], (vocab_size,), jnp.float32,
                              minval=-bound, maxval=bound)
    x = jax.random.normal(keys[5], (batch, d_model), jnp.float32)

    out = jax.block_until_ready(projection_layer(x, weight, bias))
    ref = _reference(x, weight, bias)
    assert out.shape == (batch, vocab_size)
    assert jnp.allclose(out, ref, atol=1e-5, rtol=1e-5), "mismatch (ragged)"

    print("KERNEL_OK")
</pallas_src>

<mosaic_0001>
module attributes {stable_mosaic.version = 11 : i64} {
  func.func @_projection_kernel(%arg0: i32, %arg1: i32, %arg2: memref<8x32xf32, #tpu.memory_space<vmem>>, %arg3: memref<32x256xf32, #tpu.memory_space<vmem>>, %arg4: memref<1x256xf32, #tpu.memory_space<vmem>>, %arg5: memref<8x256xf32, #tpu.memory_space<vmem>>, %arg6: memref<8x1xf32, #tpu.memory_space<vmem>>, %arg7: memref<8x1xf32, #tpu.memory_space<vmem>>) attributes {dimension_semantics = [#tpu.dimension_semantics<parallel>, #tpu.dimension_semantics<arbitrary>], iteration_bounds = array<i64: 2, 1>, scalar_prefetch = 0 : i64, scratch_operands = 2 : i64, tpu.core_type = #tpu.core_type<tc>, window_params = [{transform_indices = @transform_0, window_bounds = array<i64: 8, 32>}, {transform_indices = @transform_1, window_bounds = array<i64: 32, 256>}, {transform_indices = @transform_2, window_bounds = array<i64: 1, 256>}, {transform_indices = @transform_3, window_bounds = array<i64: 8, 256>}]} {
    %c0_i32 = arith.constant 0 : i32
    %0 = arith.cmpi eq, %arg1, %c0_i32 : i32
    %1 = arith.extui %0 : i1 to i32
    %c0_i32_0 = arith.constant 0 : i32
    %2 = arith.cmpi ne, %1, %c0_i32_0 : i32
    scf.if %2 {
      %cst_19 = arith.constant 0xFF800000 : f32
      %32 = vector.broadcast %cst_19 : f32 to vector<8x1xf32>
      %c0_20 = arith.constant 0 : index
      %c0_21 = arith.constant 0 : index
      %33 = vector.load %arg6[%c0_20, %c0_21] : memref<8x1xf32, #tpu.memory_space<vmem>>, vector<8x1xf32>
      tpu.vector_store %arg6[%c0_20, %c0_21], %32 {strides = array<i32>} : memref<8x1xf32, #tpu.memory_space<vmem>>, vector<8x1xf32>,
      %cst_22 = arith.constant 0.000000e+00 : f32
      %34 = vector.broadcast %cst_22 : f32 to vector<8x1xf32>
      %c0_23 = arith.constant 0 : index
      %c0_24 = arith.constant 0 : index
      %35 = vector.load %arg7[%c0_23, %c0_24] : memref<8x1xf32, #tpu.memory_space<vmem>>, vector<8x1xf32>
      tpu.vector_store %arg7[%c0_23, %c0_24], %34 {strides = array<i32>} : memref<8x1xf32, #tpu.memory_space<vmem>>, vector<8x1xf32>,
    } else {
    }
    %c0 = arith.constant 0 : index
    %c0_1 = arith.constant 0 : index
    %3 = vector.load %arg2[%c0, %c0_1] : memref<8x32xf32, #tpu.memory_space<vmem>>, vector<8x32xf32>
    %c0_2 = arith.constant 0 : index
    %c0_3 = arith.constant 0 : index
    %4 = vector.load %arg3[%c0_2, %c0_3] : memref<32x256xf32, #tpu.memory_space<vmem>>, vector<32x256xf32>
    %cst = arith.constant dense<0.000000e+00> : vector<8x256xf32>
    %5 = tpu.matmul %3, %4, %cst {dimension_numbers = #tpu.dot_dimension_numbers<[1], [0], [0], [1], [0, 0, 1, 1], [], []>} : vector<8x32xf32>, vector<32x256xf32>, vector<8x256xf32> -> vector<8x256xf32>
    %c0_4 = arith.constant 0 : index
    %c0_5 = arith.constant 0 : index
    %6 = vector.load %arg4[%c0_4, %c0_5] : memref<1x256xf32, #tpu.memory_space<vmem>>, vector<1x256xf32>
    %7 = vector.broadcast %6 : vector<1x256xf32> to vector<8x256xf32>
    %8 = arith.addf %5, %7 : vector<8x256xf32>
    %c256_i32 = arith.constant 256 : i32
    %9 = arith.muli %arg1, %c256_i32 : i32
    %10 = tpu.assume_multiple %9, 128 : i32
    %c0_6 = arith.constant 0 : index
    %11 = arith.index_cast %10 : i32 to index
    %12 = vector.load %arg5[%c0_6, %11] : memref<8x256xf32, #tpu.memory_space<vmem>>, vector<8x256xf32>
    tpu.vector_store %arg5[%c0_6, %11], %8 {strides = array<i32>} : memref<8x256xf32, #tpu.memory_space<vmem>>, vector<8x256xf32>,
    %c0_7 = arith.constant 0 : index
    %c0_8 = arith.constant 0 : index
    %13 = vector.load %arg6[%c0_7, %c0_8] : memref<8x1xf32, #tpu.memory_space<vmem>>, vector<8x1xf32>
    %cst_9 = arith.constant dense<0xFF800000> : vector<8xf32>
    %14 = vector.multi_reduction <maximumf>, %8, %cst_9 [1] : vector<8x256xf32> to vector<8xf32>
    %15 = vector.shape_cast %14 : vector<8xf32> to vector<8x1xf32>
    %16 = arith.maximumf %13, %15 : vector<8x1xf32>
    %c0_10 = arith.constant 0 : index
    %c0_11 = arith.constant 0 : index
    %17 = vector.load %arg7[%c0_10, %c0_11] : memref<8x1xf32, #tpu.memory_space<vmem>>, vector<8x1xf32>
    %18 = arith.subf %13, %16 : vector<8x1xf32>
    %19 = math.exp %18 : vector<8x1xf32>
    %20 = arith.mulf %17, %19 : vector<8x1xf32>
    %21 = vector.broadcast %16 : vector<8x1xf32> to vector<8x256xf32>
    %22 = arith.subf %8, %21 : vector<8x256xf32>
    %23 = math.exp %22 : vector<8x256xf32>
    %cst_12 = arith.constant dense<0.000000e+00> : vector<8xf32>
    %24 = vector.multi_reduction <add>, %23, %cst_12 [1] : vector<8x256xf32> to vector<8xf32>
    %25 = vector.shape_cast %24 : vector<8xf32> to vector<8x1xf32>
    %26 = arith.addf %20, %25 : vector<8x1xf32>
    %c0_13 = arith.constant 0 : index
    %c0_14 = arith.constant 0 : index
    %27 = vector.load %arg7[%c0_13, %c0_14] : memref<8x1xf32, #tpu.memory_space<vmem>>, vector<8x1xf32>
    tpu.vector_store %arg7[%c0_13, %c0_14], %26 {strides = array<i32>} : memref<8x1xf32, #tpu.memory_space<vmem>>, vector<8x1xf32>,
    %c0_15 = arith.constant 0 : index
    %c0_16 = arith.constant 0 : index
    %28 = vector.load %arg6[%c0_15, %c0_16] : memref<8x1xf32, #tpu.memory_space<vmem>>, vector<8x1xf32>
    tpu.vector_store %arg6[%c0_15, %c0_16], %16 {strides = array<i32>} : memref<8x1xf32, #tpu.memory_space<vmem>>, vector<8x1xf32>,
    %c0_i32_17 = arith.constant 0 : i32
    %29 = arith.cmpi eq, %arg1, %c0_i32_17 : i32
    %30 = arith.extui %29 : i1 to i32
    %c0_i32_18 = arith.constant 0 : i32
    %31 = arith.cmpi ne, %30, %c0_i32_18 : i32
    scf.if %31 {
      %c0_19 = arith.constant 0 : index
      %c0_20 = arith.constant 0 : index
      %32 = vector.load %arg6[%c0_19, %c0_20] : memref<8x1xf32, #tpu.memory_space<vmem>>, vector<8x1xf32>
      %c0_21 = arith.constant 0 : index
      %c0_22 = arith.constant 0 : index
      %33 = vector.load %arg7[%c0_21, %c0_22] : memref<8x1xf32, #tpu.memory_space<vmem>>, vector<8x1xf32>
      %34 = math.log %33 : vector<8x1xf32>
      %35 = arith.addf %32, %34 : vector<8x1xf32>
      %c0_i32_23 = arith.constant 0 : i32
      %c256_i32_24 = arith.constant 256 : i32
      %36 = arith.muli %c0_i32_23, %c256_i32_24 : i32
      %37 = tpu.assume_multiple %36, 128 : i32
      %c0_25 = arith.constant 0 : index
      %38 = arith.index_cast %37 : i32 to index
      %39 = vector.load %arg5[%c0_25, %38] : memref<8x256xf32, #tpu.memory_space<vmem>>, vector<8x256xf32>
      %40 = vector.broadcast %35 : vector<8x1xf32> to vector<8x256xf32>
      %41 = arith.subf %39, %40 : vector<8x256xf32>
      %c0_26 = arith.constant 0 : index
      %42 = arith.index_cast %37 : i32 to index
      %43 = vector.load %arg5[%c0_26, %42] : memref<8x256xf32, #tpu.memory_space<vmem>>, vector<8x256xf32>
      tpu.vector_store %arg5[%c0_26, %42], %41 {strides = array<i32>} : memref<8x256xf32, #tpu.memory_space<vmem>>, vector<8x256xf32>,
      %c1_i32 = arith.constant 1 : i32
    } else {
    }
    return
  }
  func.func @transform_0(%arg0: i32, %arg1: i32) -> (i32, i32) {
    %c0_i32 = arith.constant 0 : i32
    %c0_i32_0 = arith.constant 0 : i32
    return %arg0, %c0_i32 : i32, i32
  }
  func.func @transform_1(%arg0: i32, %arg1: i32) -> (i32, i32) {
    %c0_i32 = arith.constant 0 : i32
    %c0_i32_0 = arith.constant 0 : i32
    return %c0_i32, %arg1 : i32, i32
  }
  func.func @transform_2(%arg0: i32, %arg1: i32) -> (i32, i32) {
    %c0_i32 = arith.constant 0 : i32
    %c0_i32_0 = arith.constant 0 : i32
    return %c0_i32, %arg1 : i32, i32
  }
  func.func @transform_3(%arg0: i32, %arg1: i32) -> (i32, i32) {
    %c0_i32 = arith.constant 0 : i32
    %c0_i32_0 = arith.constant 0 : i32
    return %arg0, %c0_i32 : i32, i32
  }
}

</mosaic_0001>

<bundles_post_ra>
// kernel: tpu_custom_call.1
= control target key start
LH: loop header
LB: loop body
LE: loop exit
PB: predicated region body
PF: predicated region fallthrough
CT: control target
= control target key end

     0   :  { %8 = vsyncpa [#allocation5], 0  ;;  %s1028_s0 = inlined_call_operand.hbm [shape: f32[16,32], index: 0, kind: input, shape index: {}]   ;;  %s1029_s1 = inlined_call_operand.hbm [shape: f32[32,256], index: 1, kind: input, shape index: {}]   ;;  %s1030_s2 = inlined_call_operand.vmem [shape: f32[1,256], index: 2, kind: input, shape index: {}]   ;;  %s1031_s3 = inlined_call_operand.hbm [shape: f32[16,256], index: 3, kind: output, shape index: {}]  }
   0x1   :  { %10 = vsyncpa [#allocation5 + $0x1], 0 }
   0x2   :  { %11 = vsyncpa [#allocation8], 0 }
   0x3   :  { %12 = vsyncpa [#allocation6], 0 }
   0x4   :  { %14 = vsyncpa [#allocation6 + $0x1], 0  ;;  %s806_s12 = smov 0   ;;  %s808_s13 = smov 0  }
   0x5   :  { %s810_s14 = smov 0   ;;  %s812_s15 = smov 0  }
   0x6   :  { %s814_s16 = smov 0   ;;  %s816_s17 = smov 0  }
   0x7 LB: > { %s517_s18 = sadd.s32 4294967295, %s776_s17   ;;  %s518_s19 = sadd.s32 4294967294, %s776_s17   ;;  %s776_s17 = sphi %s816_s17, %s20_s17   ;;  %s772_s16 = sphi %s814_s16, %s1055_s16   ;;  %s768_s15 = sphi %s812_s15, %s1054_s15   ;;  %s764_s14 = sphi %s810_s14, %s1053_s14   ;;  %s760_s13 = sphi %s808_s13, %s1052_s13   ;;  %s756_s12 = sphi %s806_s12, %s1051_s12  }
   0x8   : > { %p52_p0 = scmp.ne.s32.totalorder %s760_s13, %s756_s12  ;;  %p840_p1 = scmp.eq.s32.totalorder %s517_s18, 0 }
   0x9   : > { %p844_p2 = scmp.eq.s32.totalorder %s517_s18, 1  ;;  %p134_p3 = scmp.eq.s32.totalorder %s518_s19, 1 }
   0xa   : > { %s1036_s20 = scalar_select %p840_p1, 1, 0 }
   0xb   : > { %s1037_s21 = scalar_select %p844_p2, 1, 0 }
   0xc   : > { %p850_p4 = por %p840_p1, %p52_p0  ;;  %p519_p5 = scmp.ge.s32.totalorder %s776_s17, 1 }
   0xd   : > { %p855_p6 = por %p134_p3, %p52_p0  ;;  %p141_p7 = scmp.lt.s32.totalorder %s776_s17, 3 }
   0xe   : > { %s1038_s22 = scalar_select %p850_p4, 1, 0 }
   0xf   : > { %s1039_s23 = scalar_select %p855_p6, 1, 0 }
  0x10   : > { %p860_p8 = pnand %p519_p5, %p141_p7  ;;  %s778_s25 = smov [#allocation7]  }
  0x11   : > { %s156_s26 = sshll.u32 %s778_s25, 4  ;;  %s32_s28 = sadd.s32 1, %s772_s16  ;;  %s157_s26 = int_to_ptr.vmem [resolvable:$true] %s156_s26 }
  0x12   : > { %s1040_s24 = scalar_select %p860_p8, 1, 0 }
  0x13   : > { %p552_p9 = pneg %p860_p8  ;;  %s632_s4 = scalar_lea.hbm %s1029_s1, 1024 }
  0x14   : > { %p633_p12 = scmp.ne.s32.totalorder %s1029_s1, %s632_s4  ;;  %p639_p5 = scmp.lt.u32.totalorder %s632_s4, %s1029_s1 }
  0x15   : > { %p869_p11 = pnand %p552_p9, %p840_p1 }
  0x17   : > { %p634_p13 = pneg %p869_p11 }
  0x19   : > { %p635_p0 = pnand %p634_p13, %p633_p12 }
  0x1b   : > { %p636_p3 = pneg %p635_p0 }
  0x1d   : > { %p641_p7 = pnand %p639_p5, %p636_p3 }
  0x1f   : > { %644 = shalt.err (!%p641_p7)
}
  0x20   : > { %s645_s9 = scalar_lea.vmem %s157_s26, 1024  ;;  %p653_p1 = scmp.lt.s32.totalorder %s157_s26, %s157_s26 }
  0x21   : > { %p646_p9 = scmp.ne.s32.totalorder %s157_s26, %s645_s9  ;;  %p654_p4 = scmp.lt.s32.totalorder %s645_s9, %s645_s9 }
  0x23   : > { %p648_p10 = pnand %p646_p9, %p634_p13  ;;  %p655_p8 = por %p654_p4, %p653_p1 }
  0x25   : > { %p649_p6 = pneg %p648_p10 }
  0x27   : > { %p656_p2 = pnand %p655_p8, %p649_p6 }
  0x29   : > { %659 = shalt.err (!%p656_p2)
}
  0x2a   : > { %s779_s10 = smov 256   ;;  %s780_s11 = smov 16  }
  0x2b   : > { %555 = dma.hbm_to_vmem [thread:$0]  (!%p869_p11), %s1029_s1, 1024, %s157_s26, [#allocation8], %s779_s10, %s779_s10, %s780_s11  }
  0x2c   : > { %p34_p1 = scmp.ge.s32.totalorder %s32_s28, 2  ;;  %s39_s25 = sadd.s32 1, %s764_s14 }
  0x2d   : > { %p46_p2 = scmp.ne.s32.totalorder %s764_s14, %s760_s13  ;;  %p47_p4 = scmp.eq.s32.totalorder %s776_s17, 0 }
  0x2e   : > { %s1057_s28 = smov (%p34_p1, %s32_s28), 0  ;;  %p1043_p8 = scmp.ne.s32.totalorder %s1037_s21, 0 }
  0x2f   : > { %p896_p6 = por %p47_p4, %p46_p2  ;;  %s36_s27 = ssub.s32 %s772_s16, %s1057_s28 }
  0x30   : > { %p902_p10 = por %p1043_p8, %p46_p2  ;;  %p565_p12 = scmp.lt.s32.totalorder %s776_s17, 2 }
  0x31   : > { %p37_p11 = scmp.eq.s32.totalorder %s36_s27, 0  ;;  %s178_s26 = sand.u32 1, %s764_s14  }
  0x32   : > { %s523_s4 = sshll.u32 %s178_s26, 3  ;;  %s524_s6 = sshll.u32 %s772_s16, 7 }
  0x33   : > { %s911_s5 = scalar_select %p37_p11, %s764_s14, %s39_s25  }
  0x34   : > { %s917_s9 = scalar_lea.hbm %s1028_s0, %s524_s6  ;;  %s182_s21 = scalar_lea.vmem [#allocation4], %s523_s4 }
  0x35   : > { %s189_s10 = sshll.u32 %s182_s21, 4  ;;  %p923_p13 = pnand %p565_p12, %p896_p6  ;;  %s919_s10 = int_to_ptr.vmem [resolvable:$true] %s189_s10 }
  0x36   : > { %s179_s18 = scalar_lea.sflag [#allocation5], %s178_s26  ;;  %s660_s19 = scalar_lea.hbm %s917_s9, 128 }
  0x37   : > { %p661_p0 = scmp.ne.s32.totalorder %s917_s9, %s660_s19  ;;  %p662_p3 = pneg %p923_p13 }
  0x38   : > { %s665_s4 = scalar_lea.hbm %s1028_s0, 256  ;;  %p666_p9 = scmp.lt.u32.totalorder %s917_s9, %s1028_s0 }
  0x39   : > { %p663_p5 = pnand %p662_p3, %p661_p0  ;;  %p667_p1 = scmp.lt.u32.totalorder %s665_s4, %s660_s19 }
  0x3a   : > { %p669_p4 = scmp.lt.u32.totalorder %s660_s19, %s917_s9 }
  0x3b   : > { %p664_p7 = pneg %p663_p5  ;;  %p668_p2 = por %p667_p1, %p666_p9 }
  0x3d   : > { %p670_p6 = por %p669_p4, %p668_p2 }
  0x3f   : > { %p671_p8 = pnand %p670_p6, %p664_p7 }
  0x41   : > { %674 = shalt.err (!%p671_p8)
}
  0x42   : > { %s675_s26 = scalar_lea.vmem %s919_s10, 128  ;;  %s781_s7 = smov [#allocation4]  }
  0x43   : > { %p676_p12 = scmp.ne.s32.totalorder %s919_s10, %s675_s26  ;;  %s680_s8 = sshll.u32 %s781_s7, 4  ;;  %s681_s8 = int_to_ptr.vmem [resolvable:$false] %s680_s8 }
  0x44   : > { %s682_s21 = scalar_lea.vmem %s681_s8, 256  ;;  %p683_p5 = scmp.lt.s32.totalorder %s919_s10, %s681_s8 }
  0x45   : > { %p678_p11 = pnand %p676_p12, %p662_p3  ;;  %p684_p9 = scmp.lt.s32.totalorder %s682_s21, %s675_s26 }
  0x47   : > { %p679_p0 = pneg %p678_p11  ;;  %p685_p1 = por %p684_p9, %p683_p5 }
  0x49   : > { %p686_p2 = pnand %p685_p1, %p679_p0 }
  0x4b   : > { %689 = shalt.err (!%p686_p2)
}
  0x4c   : > { %559 = dma.hbm_to_vmem [thread:$0]  (!%p923_p13), %s917_s9, 128, %s919_s10, %s179_s18  }
  0x4d   : > { %p1046_p7 = scmp.ne.s32.totalorder %s1040_s24, 0 }
  0x4e   : > { %s955_s19 = sand.u32 (!%p1046_p7), 1, %s760_s13   ;;  %p1047_p3 = scmp.ne.s32.totalorder (!%p1046_p7), %s1038_s22, 0 }
  0x4f   : > { %198 = sbr.rel (%p1046_p7) target bundleno = 920 (0x398), region = 32  ;;  %s526_s25 = sshll.u32 (!%p1046_p7), %s955_s19, 3 }
  0x50   : > { %s201_s27 = scalar_lea.sflag (!%p1046_p7), [#allocation5], %s955_s19  ;;  %s204_s4 = scalar_lea.vmem (!%p1046_p7), [#allocation4], %s526_s25 }
  0x56   : > { %743 = dma.done.wait (%p1047_p3), %s201_s27, 128  }
  0x57   : > { %745 = vsyncadd (%p1047_p3), %s201_s27, 4294967168  ;;  %p1048_p4 = scmp.ne.s32.totalorder %s1036_s20, 0 }
  0x59   : > { %747 = dma.done.wait (%p1048_p4), [#allocation8], 1024  }
  0x5a   : > { %749 = vsyncadd (%p1048_p4), [#allocation8], 4294966272  ;;  %vm245_vm0 = vcmask 7168   ;;  %v782_v0 = vmov -inf   ;;  %v783_v1 = vmov 0.0   ;;  %v250_v2 = vld [vmem:[#allocation7 + $0x8] sm:$0xff]  ;;  %v259_v15 = vlaneseq }
  0x5b   : > { %246 = vst.msk [vmem:[#allocation2] sm:$0xff] %vm245_vm0, %v782_v0  ;;  %247 = vst.msk [vmem:[#allocation3] sm:$0xff] %vm245_vm0, %v783_v1  ;;  %337 = vmatprep.mubr.f32.mxu0 %v783_v1  ;;  %v252_v3 = vld [vmem:[#allocation7 + $0x18] sm:$0xff]  ;;  %v249_v4 = vld [vmem:[#allocation7] sm:$0xff]  ;;  %vm269_vm1 = vcmask 261120   ;;  %v784_v27 = vmov 0  }
  0x5c   : > { %v536_v5 = vpack.c.bf16 %v252_v3, %v250_v2  ;;  %v251_v6 = vld [vmem:[#allocation7 + $0x10] sm:$0xff]  ;;  %v254_v7 = vld [vmem:[#allocation7 + $0x28] sm:$0xff]  ;;  %v256_v8 = vld [vmem:[#allocation7 + $0x38] sm:$0xff]  ;;  %v260_v16 = vshrl.u32 %v259_v15, 7  ;;  %622 = vset.pattern.permute.xlu0 %v784_v27  ;;  %623 = vset.pattern.permute.xlu1 %v784_v27  ;;  %s528_s24 = sshll.u32 %s955_s19, 4  ;;  %s535_s9 = sshll.u32 %s768_s15, 8 }
  0x5d   : > { %v538_v9 = vpack.c.bf16 %v251_v6, %v249_v4  ;;  %v540_v10 = vpack.c.bf16 %v256_v8, %v254_v7  ;;  %v253_v11 = vld [vmem:[#allocation7 + $0x20] sm:$0xff]  ;;  %v255_v12 = vld [vmem:[#allocation7 + $0x30] sm:$0xff]  ;;  %s234_s10 = scalar_lea.vmem [#allocation9], %s528_s24  ;;  %s979_s6 = scalar_lea.hbm %s1031_s3, %s535_s9 }
  0x5e   : > { %537 = vmatprep.subr.bf16.mxu0 %v536_v5  ;;  %v542_v13 = vpack.c.bf16 %v255_v12, %v253_v11  ;;  %v248_v14 = vld [vmem:[%s204_s4] sm:$0xff]  ;;  %v261_v17 = vsub.s32 0, %v260_v16  ;;  %v257_v18 = vld [vmem:[%s1030_s2] sm:$0x3]  ;;  %v265_v19 = vsub.s32 1, %v260_v16  ;;  %s413_s11 = sshll.u32 %s234_s10, 4  ;;  %s981_s11 = int_to_ptr.vmem [resolvable:$true] %s413_s11 }
  0x5f   : > { %539 = vmatpush1.bf16.msra.mxu0 %v538_v9  ;;  %s399_s26 = scalar_lea.sflag [#allocation6], %s955_s19  ;;  %s690_s7 = scalar_lea.vmem %s981_s11, 256 }
  0x60   : > { %541 = vmatprep.subr.bf16.mxu0 %v540_v10  ;;  %v262_v20 = vrot.slane %v257_v18, %v261_v17  ;;  %v266_v21 = vrot.slane %v257_v18, %v265_v19  ;;  %p691_p13 = scmp.ne.s32.totalorder %s981_s11, %s690_s7  ;;  %s785_s15 = smov [#allocation9]  }
  0x61   : > { %s694_s8 = sshll.u32 %s785_s15, 4  ;;  %s695_s8 = int_to_ptr.vmem [resolvable:$false] %s694_s8 }
  0x62   : > { %v351_v28 = vld [vmem:[#allocation2] sm:$0xff]  ;;  %v356_v42 = vld [vmem:[#allocation3] sm:$0xff]  ;;  %p692_p6 = pnand %p691_p13, %p902_p10  ;;  %s696_s21 = scalar_lea.vmem %s695_s8, 512 }
  0x63   : > { %543 = vmatpush1.bf16.msra.mxu0 %v542_v13  ;;  %p697_p12 = scmp.lt.s32.totalorder %s981_s11, %s695_s8  ;;  %p698_p11 = scmp.lt.s32.totalorder %s696_s21, %s690_s7 }
  0x64   : > { %p693_p8 = pneg %p692_p6 }
  0x65   : > { %p699_p0 = por %p698_p11, %p697_p12 }
  0x66   : > { %529 = vmatmul.mubr.msk.f32.vlgmr.msra.gmra.mrb[0].mxu0 %vm269_vm1, %v248_v14 }
  0x67   : > { %p700_p5 = pnand %p699_p0, %p693_p8 }
 0x139   : > { %v339_v22 = vpop.f32.mrb[0].mxu0 }
 0x13a   : > { %v340_v23 = vadd.f32 %v339_v22, %v262_v20  ;;  %v341_v24 = vpop.f32.mrb[1].mxu0 }
 0x13b   : > { %v342_v25 = vadd.f32 %v341_v24, %v266_v21 }
 0x13d   : > { %v352_v26 = vmax.f32 %v340_v23, %v342_v25 }
 0x13f   : > { %353 = vmax.xlane.f32.xlu0 %v352_v26 }
 0x1cc   : > { %v354_v29 = vpop.xlane.xlu0 %353 }
 0x1cd   : > { %v355_v30 = vmax.f32 %v351_v28, %v354_v29 }
 0x1cf   : > { %v357_v31 = vsub.f32 %v351_v28, %v355_v30  ;;  %378 = vst.msk [vmem:[#allocation2] sm:$0xff] %vm245_vm0, %v355_v30  ;;  %363 = vperm.xlu0 %622, %v355_v30  }
 0x1d1   : > { %v358_v40 = vmul.f32 1.442695, %v357_v31 }
 0x1d6   : > { %v382_v49 = vld [vmem:[#allocation2] sm:$0xff] }
 0x24e   : > { %v364_v32 = vpop.permute.xlu0 %363 }
 0x24f   : > { %v366_v33 = vsub.f32 %v340_v23, %v364_v32  ;;  %v367_v34 = vsub.f32 %v342_v25, %v364_v32 }
 0x251   : > { %v368_v35 = vmul.f32 1.442695, %v366_v33  ;;  %v370_v36 = vmul.f32 1.442695, %v367_v34 }
 0x253   : > { %624 = vpow2.f32 %v368_v35 }
 0x254   : > { %626 = vpow2.f32 %v370_v36 }
 0x255   : > { %628 = vpow2.f32 %v358_v40 }
 0x25d   : > { %v625_v37 = vpop.eup %624 }
 0x25e   : > { %v627_v38 = vpop.eup %626 }
 0x25f   : > { %v372_v39 = vadd.f32 %v627_v38, %v625_v37  ;;  %v629_v41 = vpop.eup %628 }
 0x260   : > { %v360_v43 = vmul.f32 %v629_v41, %v356_v42 }
 0x261   : > { %373 = vadd.xlane.f32.xlu1 %v372_v39 }
 0x2ee   : > { %v374_v44 = vpop.xlane.xlu1 %373 }
 0x2ef   : > { %v375_v45 = vadd.f32 %v374_v44, %v360_v43 }
 0x2f1   : > { %377 = vst.msk [vmem:[#allocation3] sm:$0xff] %vm245_vm0, %v375_v45 }
 0x2f8   : > { %v383_v46 = vld [vmem:[#allocation3] sm:$0xff] }
 0x2f9   : > { %630 = vlog2.f32 %v383_v46 }
 0x303   : > { %v631_v47 = vpop.eup %630 }
 0x304   : > { %v385_v48 = vmul.f32 0.6931472, %v631_v47 }
 0x306   : > { %v386_v50 = vadd.f32 %v385_v48, %v382_v49 }
 0x308   : > { %391 = vperm.xlu1 %623, %v386_v50  }
 0x387   : > { %v392_v51 = vpop.permute.xlu1 %391 }
 0x388   : > { %v394_v52 = vsub.f32 %v340_v23, %v392_v51  ;;  %v395_v53 = vsub.f32 %v342_v25, %v392_v51 }
 0x38a   : > { %396 = vst [vmem:[%s234_s10] sm:$0xff] %v394_v52  ;;  %397 = vst [vmem:[%s234_s10 + $0x8] sm:$0xff] %v395_v53 }
 0x38b   : > { %703 = shalt.err (!%p700_p5)
}
 0x38c   : > { %s704_s19 = scalar_lea.hbm %s979_s6, 256  ;;  %s708_s4 = scalar_lea.hbm %s1031_s3, 512 }
 0x38d   : > { %p705_p9 = scmp.ne.s32.totalorder %s979_s6, %s704_s19  ;;  %p709_p7 = scmp.lt.u32.totalorder %s979_s6, %s1031_s3 }
 0x38e   : > { %p710_p3 = scmp.lt.u32.totalorder %s708_s4, %s704_s19  ;;  %p712_p13 = scmp.lt.u32.totalorder %s704_s19, %s979_s6 }
 0x38f   : > { %p706_p1 = pnand %p705_p9, %p902_p10 }
 0x390   : > { %p711_p4 = por %p710_p3, %p709_p7 }
 0x391   : > { %p707_p2 = pneg %p706_p1 }
 0x392   : > { %p713_p6 = por %p712_p13, %p711_p4 }
 0x394   : > { %p714_p8 = pnand %p713_p6, %p707_p2 }
 0x396   : > { %717 = shalt.err (!%p714_p8)
}
 0x397   : > { %550 = dma.vmem_to_hbm [thread:$0]  (%p902_p10), %s981_s11, 256, %s979_s6, %s399_s26  }
 0x398 PF: > { %s425_s24 = sand.u32 1, %s756_s12   ;;  %p1049_p12 = scmp.ne.s32.totalorder %s1039_s23, 0 }
 0x399   : > { %p1050_p11 = scmp.ge.s32.totalorder %s776_s17, 2  ;;  %s426_s9 = scalar_lea.sflag [#allocation6], %s425_s24 }
 0x39b   : > { %p561_p0 = pnand %p1050_p11, %p1049_p12 }
 0x39d   : > { %751 = dma.done.wait (!%p561_p0), %s426_s9, 256  }
 0x39e   : > { %753 = vsyncadd (!%p561_p0), %s426_s9, 4294967040  ;;  %s20_s17 = sadd.s32 1, %s776_s17   ;;  %s1051_s12 = smov %s760_s13 }
 0x39f   : > { %p17_p5 = scmp.ge.s32.totalorder %s20_s17, 4   ;;  %s1052_s13 = smov %s764_s14 }
 0x3a0   : > { %s1053_s14 = smov %s911_s5  ;;  %s1054_s15 = smov %s772_s16 }
 0x3a1   : > { %s1055_s16 = smov %s1057_s28  ;;  %19 = sbr.rel (!%p17_p5) target bundleno = 7 (0x7), region = 94 }
 0x3a8   :  { %431 = vsyncpa [#allocation5], 1 }
 0x3a9   :  { %433 = vsyncpa [#allocation5 + $0x1], 1 }
 0x3aa   :  { %434 = vsyncpa [#allocation8], 1 }
 0x3ab   :  { %435 = vsyncpa [#allocation6], 1 }
 0x3ac   :  { %437 = vsyncpa [#allocation6 + $0x1], 1 }

</bundles_post_ra>
